<compile_context>
chip_gen: v7x
topology: tpu7x:2x2x1
jax: 0.10.0
libtpu: 0.0.40
codegen_flags: <defaults>
</compile_context>

<pallas_src>
import jax
import jax.numpy as jnp
from jax.experimental import pallas as pl
from jax.experimental.pallas import tpu as pltpu


def _round_up(x, m):
    return ((x + m - 1) // m) * m


def _cdiv(a, b):
    return -(-a // b)


# ---------------------------------------------------------------------------
# Kernel: fused feature construction ([p, h, p*h, |p-h|]) + 3-layer MLP.
# ---------------------------------------------------------------------------
def _snli_mlp_kernel(p_ref, h_ref, w1_ref, b1_ref, w2_ref, b2_ref,
                     w3_ref, b3_ref, o_ref):
    p = p_ref[...]                       # (TILE_B, H_pad) f32
    h = h_ref[...]                       # (TILE_B, H_pad) f32

    # Feature math in f32 on the VPU (matches the f32 reference), one bf16
    # cast per segment, then a lane-aligned concat feeding ONE K=4*H_pad dot.
    feats = jnp.concatenate(
        [p.astype(jnp.bfloat16),
         h.astype(jnp.bfloat16),
         (p * h).astype(jnp.bfloat16),
         jnp.abs(p - h).astype(jnp.bfloat16)],
        axis=-1)                         # (TILE_B, 4*H_pad) bf16

    # Three Linear layers, no nonlinearity (matches the reference
    # nn.Sequential exactly); bf16 operands, f32 accumulation.
    x = jnp.dot(feats, w1_ref[...],
                preferred_element_type=jnp.float32) + b1_ref[...]
    x = jnp.dot(x.astype(jnp.bfloat16), w2_ref[...],
                preferred_element_type=jnp.float32) + b2_ref[...]
    x = jnp.dot(x.astype(jnp.bfloat16), w3_ref[...],
                preferred_element_type=jnp.float32) + b3_ref[...]
    o_ref[...] = x.astype(o_ref.dtype)   # lane-padded class dim


# ---------------------------------------------------------------------------
# One-time weight preparation (hoisted out of the forward path).
# ---------------------------------------------------------------------------
def prepare_params(params):
    """Cast / pad weights once. Weights stored as [in, out] (PyTorch nn.Linear
    weights are [out, in]).  The returned arrays become jit constants when
    closed over by `make_forward`."""
    w1 = jnp.asarray(params["w1"], jnp.float32)          # (4H, hidden)
    H = w1.shape[0] // 4
    hidden = w1.shape[1]
    n_classes = params["w3"].shape[1]

    H_pad = _round_up(max(H, 128), 128)
    nc_pad = _round_up(max(n_classes, 128), 128)

    # Row re-layout of w1: each feature segment gets an H_pad-aligned row band
    # (zero rows for the padded tail) so the in-kernel concat lines up.
    w1p = jnp.zeros((4 * H_pad, hidden), jnp.bfloat16)
    for s in range(4):
        w1p = w1p.at[s * H_pad:s * H_pad + H, :].set(
            w1[s * H:(s + 1) * H, :].astype(jnp.bfloat16))

    w3p = jnp.zeros((hidden, nc_pad), jnp.bfloat16)
    w3p = w3p.at[:, :n_classes].set(params["w3"].astype(jnp.bfloat16))
    b3p = jnp.zeros((1, nc_pad), jnp.float32)
    b3p = b3p.at[:, :n_classes].set(
        jnp.asarray(params["b3"], jnp.float32).reshape(1, -1))

    prepared = dict(
        w1=w1p,
        b1=jnp.asarray(params["b1"], jnp.float32).reshape(1, hidden),
        w2=params["w2"].astype(jnp.bfloat16),
        b2=jnp.asarray(params["b2"], jnp.float32).reshape(1, hidden),
        w3=w3p,
        b3=b3p)
    meta = dict(H=H, H_pad=H_pad, hidden=hidden,
                n_classes=n_classes, nc_pad=nc_pad)
    return prepared, meta


def _select_tile_b(B, H_pad, hidden, nc_pad, weight_bytes, out_itemsize,
                   max_tile_b, vmem_cap):
    # Per-row VMEM: double-buffered p/h f32 tiles + double-buffered output
    # tile + in-kernel live values (f32 features, bf16 concat, f32 acts).
    per_row = (2 * 2 * H_pad * 4
               + 2 * nc_pad * out_itemsize
               + 4 * H_pad * (4 + 2)
               + 3 * hidden * 4)
    budget = max(vmem_cap - 2 * weight_bytes, 4 << 20)
    tile_cap = max(16, min(max_tile_b, (budget // per_row) // 16 * 16))
    # >=2 grid steps when possible so the "parallel" axis feeds both v7x TCs;
    # tile is sized from B so we never add a mostly-dead padded tile.
    n_tiles = max(2 if B > 16 else 1, _cdiv(B, tile_cap))
    return _round_up(_cdiv(B, n_tiles), 16)


def _mlp_logits(p_emb, h_emb, prepared, meta, *, max_tile_b=512,
                out_dtype=jnp.bfloat16, vmem_cap=48 << 20):
    """p_emb, h_emb: (B, H) f32 sentence embeddings -> (b_pad, nc_pad) logits
    slab (lane-padded classes, batch padded to the tile)."""
    B, H = p_emb.shape
    assert H == meta["H"], (H, meta["H"])
    H_pad, hidden, nc_pad = meta["H_pad"], meta["hidden"], meta["nc_pad"]

    if H_pad != H:
        p_emb = jnp.pad(p_emb, ((0, 0), (0, H_pad - H)))
        h_emb = jnp.pad(h_emb, ((0, 0), (0, H_pad - H)))

    weight_bytes = sum(int(a.size) * a.dtype.itemsize
                       for a in prepared.values())
    out_itemsize = jnp.dtype(out_dtype).itemsize
    tile_b = _select_tile_b(B, H_pad, hidden, nc_pad, weight_bytes,
                            out_itemsize, max_tile_b, vmem_cap)
    grid = (_cdiv(B, tile_b),)
    b_pad = grid[0] * tile_b
    if b_pad != B:
        p_emb = jnp.pad(p_emb, ((0, b_pad - B), (0, 0)))
        h_emb = jnp.pad(h_emb, ((0, b_pad - B), (0, 0)))

    act_bytes = tile_b * (2 * 2 * H_pad * 4 + 2 * nc_pad * out_itemsize
                          + 4 * H_pad * 6 + 3 * hidden * 4)
    # Clamp to <= 56 MiB so the budget also fits v7x's 64 MiB physical VMEM.
    vmem_limit = int(min(56 << 20,
                         max(8 << 20, 2 * weight_bytes + act_bytes)))

    flops = 2 * b_pad * (4 * H_pad * hidden + hidden * hidden
                         + hidden * nc_pad)
    bytes_accessed = (2 * b_pad * H_pad * 4 + weight_bytes
                      + b_pad * nc_pad * out_itemsize)

    w1, b1, w2, b2, w3, b3 = (prepared[k]
                              for k in ("w1", "b1", "w2", "b2", "w3", "b3"))

    return pl.pallas_call(
        _snli_mlp_kernel,
        out_shape=jax.ShapeDtypeStruct((b_pad, nc_pad), out_dtype),
        grid_spec=pltpu.PrefetchScalarGridSpec(
            num_scalar_prefetch=0,
            grid=grid,
            in_specs=[
                pl.BlockSpec((tile_b, H_pad), lambda i: (i, 0)),  # premise
                pl.BlockSpec((tile_b, H_pad), lambda i: (i, 0)),  # hypothesis
                pl.BlockSpec(w1.shape, lambda i: (0, 0)),   # weights stay
                pl.BlockSpec(b1.shape, lambda i: (0, 0)),   # VMEM-resident
                pl.BlockSpec(w2.shape, lambda i: (0, 0)),
                pl.BlockSpec(b2.shape, lambda i: (0, 0)),
                pl.BlockSpec(w3.shape, lambda i: (0, 0)),
                pl.BlockSpec(b3.shape, lambda i: (0, 0)),
            ],
            out_specs=pl.BlockSpec((tile_b, nc_pad), lambda i: (i, 0)),
        ),
        compiler_params=pltpu.CompilerParams(
            dimension_semantics=("parallel",),
            vmem_limit_bytes=vmem_limit),
        cost_estimate=pl.CostEstimate(
            flops=flops, transcendentals=0, bytes_accessed=bytes_accessed),
    )(p_emb, h_emb, w1, b1, w2, b2, w3, b3)


def make_forward(params, *, max_tile_b=512, out_dtype=jnp.bfloat16,
                 slice_output=True):
    """Build a jitted forward(p_emb, h_emb) with the weight prep hoisted out
    of the per-call path (prepared weights become jit constants)."""
    prepared, meta = prepare_params(params)
    n_classes = meta["n_classes"]

    @jax.jit
    def forward(p_emb, h_emb):
        out = _mlp_logits(p_emb, h_emb, prepared, meta,
                          max_tile_b=max_tile_b, out_dtype=out_dtype)
        if slice_output:
            out = out[:p_emb.shape[0], :n_classes]
        return out

    return forward


# ---------------------------------------------------------------------------
# Stand-in embedder + init (plain JAX glue).
# ---------------------------------------------------------------------------
def mean_pool_embedder(tokens, lengths, emb_table):
    """Deterministic stand-in embedder: lookup + masked mean pool.
    tokens: (B, S) int32, lengths: (B,) int32, emb_table: (V, H) f32."""
    emb = emb_table[tokens]                                   # (B, S, H)
    S = tokens.shape[1]
    mask = (jnp.arange(S)[None, :] < lengths[:, None]).astype(jnp.float32)
    summed = jnp.sum(emb * mask[:, :, None], axis=1)          # (B, H)
    return summed / jnp.maximum(lengths[:, None].astype(jnp.float32), 1.0)


def init_params(key, n_hidden, hidden_dim, n_classes):
    """nn.Linear-style uniform init; weights stored as [in, out]."""
    n_features = 4 * n_hidden
    dims = [(n_features, hidden_dim), (hidden_dim, hidden_dim),
            (hidden_dim, n_classes)]
    params = {}
    for i, (fan_in, fan_out) in enumerate(dims, start=1):
        key, kw, kb = jax.random.split(key, 3)
        bound = 1.0 / (fan_in ** 0.5)
        params[f"w{i}"] = jax.random.uniform(
            kw, (fan_in, fan_out), jnp.float32, -bound, bound)
        params[f"b{i}"] = jax.random.uniform(
            kb, (1, fan_out), jnp.float32, -bound, bound)
    return params, key


if __name__ == "__main__":
    key = jax.random.PRNGKey(0)

    # Small but tiling-exercising shapes consistent with the module's forward.
    B = 256          # batch -> 2 grid steps of 128 rows
    S = 8            # sequence length (stand-in embedder)
    V = 64           # vocab size
    n_hidden = 128   # embedder.n_hidden -> n_features = 512 (one K=512 dot)
    hidden_dim = 256
    n_classes = 3    # SNLI-style; lane-padded to 128 inside the kernel

    params, key = init_params(key, n_hidden, hidden_dim, n_classes)
    forward = make_forward(params)        # weight prep done exactly once

    key, k_tab, k_p, k_h, k_lp, k_lh = jax.random.split(key, 6)
    emb_table = jax.random.normal(k_tab, (V, n_hidden), jnp.float32)
    premise = jax.random.randint(k_p, (B, S), 0, V, jnp.int32)
    hypothesis = jax.random.randint(k_h, (B, S), 0, V, jnp.int32)
    premise_len = jax.random.randint(k_lp, (B,), 1, S + 1, jnp.int32)
    hypothesis_len = jax.random.randint(k_lh, (B,), 1, S + 1, jnp.int32)

    @jax.jit
    def end_to_end(premise, premise_len, hypothesis, hypothesis_len,
                   emb_table):
        p_emb = mean_pool_embedder(premise, premise_len, emb_table)
        h_emb = mean_pool_embedder(hypothesis, hypothesis_len, emb_table)
        return forward(p_emb, h_emb)

    logits = end_to_end(premise, premise_len, hypothesis, hypothesis_len,
                        emb_table)
    logits = jax.block_until_ready(logits)

    # Pure-JAX reference mirroring the kernel numerics (bf16 matmul operands,
    # f32 accumulation).
    p_emb = mean_pool_embedder(premise, premise_len, emb_table)
    h_emb = mean_pool_embedder(hypothesis, hypothesis_len, emb_table)

    def ref_forward(p, h, params):
        x = jnp.concatenate([p, h, p * h, jnp.abs(p - h)], axis=1)
        for i in (1, 2, 3):
            w = params[f"w{i}"].astype(jnp.bfloat16)
            x = jnp.dot(x.astype(jnp.bfloat16), w,
                        preferred_element_type=jnp.float32) + params[f"b{i}"]
        return x

    ref = ref_forward(p_emb, h_emb, params)
    assert logits.shape == (B, n_classes), logits.shape
    logits_f32 = logits.astype(jnp.float32)
    max_err = float(jnp.max(jnp.abs(logits_f32 - ref)))
    assert jnp.allclose(logits_f32, ref, atol=3e-2, rtol=3e-2), max_err

    print("KERNEL_OK")
</pallas_src>

<mosaic_0001>
module attributes {stable_mosaic.version = 11 : i64} {
  func.func @_snli_mlp_kernel(%arg0: i32, %arg1: memref<128x128xf32, #tpu.memory_space<vmem>>, %arg2: memref<128x128xf32, #tpu.memory_space<vmem>>, %arg3: memref<512x256xbf16, #tpu.memory_space<vmem>>, %arg4: memref<1x256xf32, #tpu.memory_space<vmem>>, %arg5: memref<256x256xbf16, #tpu.memory_space<vmem>>, %arg6: memref<1x256xf32, #tpu.memory_space<vmem>>, %arg7: memref<256x128xbf16, #tpu.memory_space<vmem>>, %arg8: memref<1x128xf32, #tpu.memory_space<vmem>>, %arg9: memref<128x128xbf16, #tpu.memory_space<vmem>>) attributes {dimension_semantics = [#tpu.dimension_semantics<parallel>], iteration_bounds = array<i64: 2>, scalar_prefetch = 0 : i64, scratch_operands = 0 : i64, tpu.core_type = #tpu.core_type<tc>, window_params = [{transform_indices = @transform_0, window_bounds = array<i64: 128, 128>}, {transform_indices = @transform_1, window_bounds = array<i64: 128, 128>}, {pipeline_mode = #tpu.pipeline_mode<synchronous>, transform_indices = @transform_2, window_bounds = array<i64: 512, 256>}, {pipeline_mode = #tpu.pipeline_mode<synchronous>, transform_indices = @transform_3, window_bounds = array<i64: 1, 256>}, {pipeline_mode = #tpu.pipeline_mode<synchronous>, transform_indices = @transform_4, window_bounds = array<i64: 256, 256>}, {pipeline_mode = #tpu.pipeline_mode<synchronous>, transform_indices = @transform_5, window_bounds = array<i64: 1, 256>}, {pipeline_mode = #tpu.pipeline_mode<synchronous>, transform_indices = @transform_6, window_bounds = array<i64: 256, 128>}, {pipeline_mode = #tpu.pipeline_mode<synchronous>, transform_indices = @transform_7, window_bounds = array<i64: 1, 128>}, {transform_indices = @transform_8, window_bounds = array<i64: 128, 128>}]} {
    %c0 = arith.constant 0 : index
    %c0_0 = arith.constant 0 : index
    %0 = vector.load %arg1[%c0, %c0_0] : memref<128x128xf32, #tpu.memory_space<vmem>>, vector<128x128xf32>
    %c0_1 = arith.constant 0 : index
    %c0_2 = arith.constant 0 : index
    %1 = vector.load %arg2[%c0_1, %c0_2] : memref<128x128xf32, #tpu.memory_space<vmem>>, vector<128x128xf32>
    %2 = arith.truncf %0 : vector<128x128xf32> to vector<128x128xbf16>
    %3 = arith.truncf %1 : vector<128x128xf32> to vector<128x128xbf16>
    %4 = arith.mulf %0, %1 : vector<128x128xf32>
    %5 = arith.truncf %4 : vector<128x128xf32> to vector<128x128xbf16>
    %6 = arith.subf %0, %1 : vector<128x128xf32>
    %7 = math.absf %6 : vector<128x128xf32>
    %8 = arith.truncf %7 : vector<128x128xf32> to vector<128x128xbf16>
    %9 = tpu.concatenate %2, %3, %5, %8 in 1 : vector<128x128xbf16>, vector<128x128xbf16>, vector<128x128xbf16>, vector<128x128xbf16> -> vector<128x512xbf16>
    %c0_3 = arith.constant 0 : index
    %c0_4 = arith.constant 0 : index
    %10 = vector.load %arg3[%c0_3, %c0_4] : memref<512x256xbf16, #tpu.memory_space<vmem>>, vector<512x256xbf16>
    %cst = arith.constant dense<0.000000e+00> : vector<128x256xf32>
    %11 = tpu.matmul %9, %10, %cst {dimension_numbers = #tpu.dot_dimension_numbers<[1], [0], [0], [1], [0, 0, 1, 1], [], []>} : vector<128x512xbf16>, vector<512x256xbf16>, vector<128x256xf32> -> vector<128x256xf32>
    %c0_5 = arith.constant 0 : index
    %c0_6 = arith.constant 0 : index
    %12 = vector.load %arg4[%c0_5, %c0_6] : memref<1x256xf32, #tpu.memory_space<vmem>>, vector<1x256xf32>
    %13 = vector.broadcast %12 : vector<1x256xf32> to vector<128x256xf32>
    %14 = arith.addf %11, %13 : vector<128x256xf32>
    %15 = arith.truncf %14 : vector<128x256xf32> to vector<128x256xbf16>
    %c0_7 = arith.constant 0 : index
    %c0_8 = arith.constant 0 : index
    %16 = vector.load %arg5[%c0_7, %c0_8] : memref<256x256xbf16, #tpu.memory_space<vmem>>, vector<256x256xbf16>
    %cst_9 = arith.constant dense<0.000000e+00> : vector<128x256xf32>
    %17 = tpu.matmul %15, %16, %cst_9 {dimension_numbers = #tpu.dot_dimension_numbers<[1], [0], [0], [1], [0, 0, 1, 1], [], []>} : vector<128x256xbf16>, vector<256x256xbf16>, vector<128x256xf32> -> vector<128x256xf32>
    %c0_10 = arith.constant 0 : index
    %c0_11 = arith.constant 0 : index
    %18 = vector.load %arg6[%c0_10, %c0_11] : memref<1x256xf32, #tpu.memory_space<vmem>>, vector<1x256xf32>
    %19 = vector.broadcast %18 : vector<1x256xf32> to vector<128x256xf32>
    %20 = arith.addf %17, %19 : vector<128x256xf32>
    %21 = arith.truncf %20 : vector<128x256xf32> to vector<128x256xbf16>
    %c0_12 = arith.constant 0 : index
    %c0_13 = arith.constant 0 : index
    %22 = vector.load %arg7[%c0_12, %c0_13] : memref<256x128xbf16, #tpu.memory_space<vmem>>, vector<256x128xbf16>
    %cst_14 = arith.constant dense<0.000000e+00> : vector<128x128xf32>
    %23 = tpu.matmul %21, %22, %cst_14 {dimension_numbers = #tpu.dot_dimension_numbers<[1], [0], [0], [1], [0, 0, 1, 1], [], []>} : vector<128x256xbf16>, vector<256x128xbf16>, vector<128x128xf32> -> vector<128x128xf32>
    %c0_15 = arith.constant 0 : index
    %c0_16 = arith.constant 0 : index
    %24 = vector.load %arg8[%c0_15, %c0_16] : memref<1x128xf32, #tpu.memory_space<vmem>>, vector<1x128xf32>
    %25 = vector.broadcast %24 : vector<1x128xf32> to vector<128x128xf32>
    %26 = arith.addf %23, %25 : vector<128x128xf32>
    %27 = arith.truncf %26 : vector<128x128xf32> to vector<128x128xbf16>
    %c0_17 = arith.constant 0 : index
    %c0_18 = arith.constant 0 : index
    %28 = vector.load %arg9[%c0_17, %c0_18] : memref<128x128xbf16, #tpu.memory_space<vmem>>, vector<128x128xbf16>
    tpu.vector_store %arg9[%c0_17, %c0_18], %27 {strides = array<i32>} : memref<128x128xbf16, #tpu.memory_space<vmem>>, vector<128x128xbf16>,
    return
  }
  func.func @transform_0(%arg0: i32) -> (i32, i32) {
    %c0_i32 = arith.constant 0 : i32
    %c0_i32_0 = arith.constant 0 : i32
    return %arg0, %c0_i32 : i32, i32
  }
  func.func @transform_1(%arg0: i32) -> (i32, i32) {
    %c0_i32 = arith.constant 0 : i32
    %c0_i32_0 = arith.constant 0 : i32
    return %arg0, %c0_i32 : i32, i32
  }
  func.func @transform_2(%arg0: i32) -> (i32, i32) {
    %c0_i32 = arith.constant 0 : i32
    %c0_i32_0 = arith.constant 0 : i32
    %c0_i32_1 = arith.constant 0 : i32
    return %c0_i32, %c0_i32_0 : i32, i32
  }
  func.func @transform_3(%arg0: i32) -> (i32, i32) {
    %c0_i32 = arith.constant 0 : i32
    %c0_i32_0 = arith.constant 0 : i32
    %c0_i32_1 = arith.constant 0 : i32
    return %c0_i32, %c0_i32_0 : i32, i32
  }
  func.func @transform_4(%arg0: i32) -> (i32, i32) {
    %c0_i32 = arith.constant 0 : i32
    %c0_i32_0 = arith.constant 0 : i32
    %c0_i32_1 = arith.constant 0 : i32
    return %c0_i32, %c0_i32_0 : i32, i32
  }
  func.func @transform_5(%arg0: i32) -> (i32, i32) {
    %c0_i32 = arith.constant 0 : i32
    %c0_i32_0 = arith.constant 0 : i32
    %c0_i32_1 = arith.constant 0 : i32
    return %c0_i32, %c0_i32_0 : i32, i32
  }
  func.func @transform_6(%arg0: i32) -> (i32, i32) {
    %c0_i32 = arith.constant 0 : i32
    %c0_i32_0 = arith.constant 0 : i32
    %c0_i32_1 = arith.constant 0 : i32
    return %c0_i32, %c0_i32_0 : i32, i32
  }
  func.func @transform_7(%arg0: i32) -> (i32, i32) {
    %c0_i32 = arith.constant 0 : i32
    %c0_i32_0 = arith.constant 0 : i32
    %c0_i32_1 = arith.constant 0 : i32
    return %c0_i32, %c0_i32_0 : i32, i32
  }
  func.func @transform_8(%arg0: i32) -> (i32, i32) {
    %c0_i32 = arith.constant 0 : i32
    %c0_i32_0 = arith.constant 0 : i32
    return %arg0, %c0_i32 : i32, i32
  }
}

</mosaic_0001>

<bundles_post_ra>
// kernel: forward.1
= control target key start
LH: loop header
LB: loop body
LE: loop exit
PB: predicated region body
PF: predicated region fallthrough
CT: control target
= control target key end

     0   :  { %s2349_s27 = smov 0   ;;  %s3097_s0 = inlined_call_operand.vmem [shape: f32[256,128], index: 0, kind: input, shape index: {}]   ;;  %s3098_s1 = inlined_call_operand.vmem [shape: f32[256,128], index: 1, kind: input, shape index: {}]   ;;  %s3099_s2 = inlined_call_operand.vmem [shape: bf16[512,256], index: 2, kind: input, shape index: {}]   ;;  %s3100_s3 = inlined_call_operand.vmem [shape: f32[1,256], index: 3, kind: input, shape index: {}]   ;;  %s3101_s4 = inlined_call_operand.vmem [shape: bf16[256,256], index: 4, kind: input, shape index: {}]   ;;  %s3102_s5 = inlined_call_operand.vmem [shape: f32[1,256], index: 5, kind: input, shape index: {}]   ;;  %s3103_s6 = inlined_call_operand.vmem [shape: bf16[256,128], index: 6, kind: input, shape index: {}]   ;;  %s3104_s7 = inlined_call_operand.vmem [shape: f32[1,128], index: 7, kind: input, shape index: {}]   ;;  %s3105_s8 = inlined_call_operand.vmem [shape: bf16[256,128], index: 8, kind: output, shape index: {}]  }
   0x1 LB: > { %s1795_s28 = sadd.s32 4294967295, %s2302_s27   ;;  %p1799_p0 = scmp.ge.s32.totalorder %s2302_s27, 1  ;;  %s2302_s27 = sphi %s2349_s27, %s18_s27  }
   0x2   : > { %p274_p1 = scmp.lt.s32.totalorder %s2302_s27, 3 }
   0x4   : > { %p275_p2 = pnand %p1799_p0, %p274_p1 }
   0x5   : > { %v2136_v0 = vld [vmem:[%s3099_s2 + $0x4] ss:$8 sps:$4 sm:$0xff] (!%p275_p2)   ;;  %v2138_v1 = vld [vmem:[%s3099_s2] ss:$8 sps:$4 sm:$0xff] (!%p275_p2)   ;;  %v2139_v2 = vld [vmem:[%s3099_s2 + $0x14] ss:$8 sps:$4 sm:$0xff] (!%p275_p2)  }
   0x6   : > { %278 = sbr.rel (%p275_p2) target bundleno = 852 (0x354), region = 52  ;;  %840 = vmatprep.subr.bf16.mxu0 (!%p275_p2), %v2136_v0  ;;  %v2141_v3 = vld [vmem:[%s3099_s2 + $0x10] ss:$8 sps:$4 sm:$0xff] (!%p275_p2)   ;;  %v2142_v4 = vld [vmem:[%s3099_s2 + $0x24] ss:$8 sps:$4 sm:$0xff] (!%p275_p2)   ;;  %s1800_s17 = sshll.u32 (!%p275_p2), %s1795_s28, 4 }
   0x7   : > { %841 = vmatpush1.bf16.msra.mxu0 (!%p275_p2), %v2138_v1  ;;  %v2144_v5 = vld [vmem:[%s3099_s2 + $0x20] ss:$8 sps:$4 sm:$0xff] (!%p275_p2)   ;;  %p314_p3 = scmp.lt.s32.totalorder (!%p275_p2), %s1800_s17, 31  ;;  %v2145_v6 = vld [vmem:[%s3099_s2 + $0x34] ss:$8 sps:$4 sm:$0xff] (!%p275_p2)  }
   0x8   : > { %842 = vmatprep.subr.bf16.mxu0 (!%p275_p2), %v2139_v2  ;;  %v2147_v7 = vld [vmem:[%s3099_s2 + $0x30] ss:$8 sps:$4 sm:$0xff] (!%p275_p2)   ;;  %v2148_v8 = vld [vmem:[%s3099_s2 + $0x44] ss:$8 sps:$4 sm:$0xff] (!%p275_p2)   ;;  %v2150_v9 = vld [vmem:[%s3099_s2 + $0x40] ss:$8 sps:$4 sm:$0xff] (!%p275_p2)  }
   0x9   : > { %v2151_v10 = vld [vmem:[%s3099_s2 + $0x54] ss:$8 sps:$4 sm:$0xff] (!%p275_p2)   ;;  %v2153_v11 = vld [vmem:[%s3099_s2 + $0x50] ss:$8 sps:$4 sm:$0xff] (!%p275_p2)   ;;  %v2154_v12 = vld [vmem:[%s3099_s2 + $0x64] ss:$8 sps:$4 sm:$0xff] (!%p275_p2)  }
   0xa   : > { %v2156_v17 = vld [vmem:[%s3099_s2 + $0x60] ss:$8 sps:$4 sm:$0xff] (!%p275_p2)   ;;  %v2157_v22 = vld [vmem:[%s3099_s2 + $0x74] ss:$8 sps:$4 sm:$0xff] (!%p275_p2)   ;;  %v2159_v24 = vld [vmem:[%s3099_s2 + $0x70] ss:$8 sps:$4 sm:$0xff] (!%p275_p2)  }
   0xb   : > { %843 = vmatpush1.bf16.msra.mxu0 (!%p275_p2), %v2141_v3  ;;  %v2160_v33 = vld [vmem:[%s3099_s2 + $0x84] ss:$8 sps:$4 sm:$0xff] (!%p275_p2)   ;;  %v2162_v36 = vld [vmem:[%s3099_s2 + $0x80] ss:$8 sps:$4 sm:$0xff] (!%p275_p2)   ;;  %v2163_v43 = vld [vmem:[%s3099_s2 + $0x94] ss:$8 sps:$4 sm:$0xff] (!%p275_p2)  }
   0xc   : > { %844 = vmatprep.subr.bf16.mxu0 (!%p275_p2), %v2142_v4  ;;  %v2165_v45 = vld [vmem:[%s3099_s2 + $0x90] ss:$8 sps:$4 sm:$0xff] (!%p275_p2)   ;;  %v2166_v52 = vld [vmem:[%s3099_s2 + $0xa4] ss:$8 sps:$4 sm:$0xff] (!%p275_p2)   ;;  %v2168_v54 = vld [vmem:[%s3099_s2 + $0xa0] ss:$8 sps:$4 sm:$0xff] (!%p275_p2)  }
   0xd   : > { %s3110_s17 = smov (!%p314_p3, %s1800_s17), 31  ;;  %v2169_v61 = vld [vmem:[%s3099_s2 + $0xb4] ss:$8 sps:$4 sm:$0xff]   ;;  %v2171_v63 = vld [vmem:[%s3099_s2 + $0xb0] ss:$8 sps:$4 sm:$0xff]  }
   0xe   : > { %s1801_s29 = sshll.u32 %s3110_s17, 3  ;;  %s1805_s28 = sshll.u32 %s3110_s17, 2 }
   0xf   : > { %845 = vmatpush1.bf16.msra.mxu0 %v2144_v5  ;;  %s2396_s12 = scalar_lea.vmem %s3097_s0, %s1801_s29  ;;  %s2404_s18 = scalar_lea.vmem %s3098_s1, %s1801_s29 }
  0x10   : > { %846 = vmatprep.subr.bf16.mxu0 %v2145_v6  ;;  %v2410_v13 = vld [vmem:[%s2396_s12] sm:$0xff]  ;;  %v2413_v14 = vld [vmem:[%s2396_s12 + $0x8] sm:$0xff]  ;;  %v2441_v28 = vld [vmem:[%s2404_s18 + $0x10] sm:$0xff]  ;;  %s3070_s9 = scalar_lea.vmem %s3105_s8, %s1805_s28 }
  0x11   : > { %v348_v15 = vld [vmem:[%s2404_s18] sm:$0xff]  ;;  %v349_v16 = vld [vmem:[%s2404_s18 + $0x8] sm:$0xff]  ;;  %v2444_v29 = vld [vmem:[%s2396_s12 + $0x10] sm:$0xff] }
  0x12   : > { %v372_v18 = vpack.c.bf16 %v349_v16, %v348_v15  ;;  %v2421_v19 = vmul.f32 %v348_v15, %v2410_v13  ;;  %v2424_v20 = vmul.f32 %v349_v16, %v2413_v14  ;;  %v404_v21 = vsub.f32 %v2410_v13, %v348_v15  ;;  %v2447_v30 = vld [vmem:[%s2404_s18 + $0x18] sm:$0xff]  ;;  %v2469_v37 = vld [vmem:[%s2404_s18 + $0x20] sm:$0xff]  ;;  %v2477_v40 = vld [vmem:[%s2404_s18 + $0x28] sm:$0xff] }
  0x13   : > { %847 = vmatpush1.bf16.msra.mxu0 %v2147_v7  ;;  %v405_v23 = vsub.f32 %v2413_v14, %v349_v16  ;;  %v2450_v31 = vld [vmem:[%s2396_s12 + $0x18] sm:$0xff]  ;;  %v2454_v32 = vmul.f32 %v2441_v28, %v2444_v29  ;;  %v2472_v38 = vld [vmem:[%s2396_s12 + $0x20] sm:$0xff]  ;;  %v2480_v41 = vld [vmem:[%s2396_s12 + $0x28] sm:$0xff] }
  0x14   : > { %848 = vmatprep.subr.bf16.mxu0 %v2148_v8  ;;  %v396_v25 = vpack.c.bf16 %v2424_v20, %v2421_v19  ;;  %v2436_v26 = vand.u32 2147483647, %v404_v21  ;;  %872 = vmatprep.mubr.bf16.mxu0 %v372_v18  ;;  %v2463_v35 = vmul.f32 %v2447_v30, %v2450_v31  ;;  %v2484_v42 = vmul.f32 %v2469_v37, %v2472_v38  ;;  %v2497_v46 = vld [vmem:[%s2404_s18 + $0x30] sm:$0xff]  ;;  %v2505_v49 = vld [vmem:[%s2404_s18 + $0x38] sm:$0xff]  ;;  %v2525_v55 = vld [vmem:[%s2404_s18 + $0x40] sm:$0xff] }
  0x15   : > { %v2438_v27 = vand.u32 2147483647, %v405_v23  ;;  %v2491_v44 = vmul.f32 %v2477_v40, %v2480_v41  ;;  %v2500_v47 = vld [vmem:[%s2396_s12 + $0x30] sm:$0xff]  ;;  %v2508_v50 = vld [vmem:[%s2396_s12 + $0x38] sm:$0xff]  ;;  %v2528_v56 = vld [vmem:[%s2396_s12 + $0x40] sm:$0xff] }
  0x16   : > { %v397_v39 = vpack.c.bf16 %v2463_v35, %v2454_v32  ;;  %v2512_v51 = vmul.f32 %v2497_v46, %v2500_v47  ;;  %v2519_v53 = vmul.f32 %v2505_v49, %v2508_v50  ;;  %v2533_v58 = vld [vmem:[%s2404_s18 + $0x48] sm:$0xff]  ;;  %v2540_v60 = vmul.f32 %v2525_v55, %v2528_v56  ;;  %v2553_v0 = vld [vmem:[%s2404_s18 + $0x50] sm:$0xff]  ;;  %v2561_v3 = vld [vmem:[%s2404_s18 + $0x58] sm:$0xff] }
  0x17   : > { %849 = vmatpush1.bf16.msra.mxu0 %v2150_v9  ;;  %v436_v34 = vpack.c.bf16 %v2438_v27, %v2436_v26  ;;  %v398_v48 = vpack.c.bf16 %v2491_v44, %v2484_v42  ;;  %v2536_v59 = vld [vmem:[%s2396_s12 + $0x48] sm:$0xff]  ;;  %v2556_v1 = vld [vmem:[%s2396_s12 + $0x50] sm:$0xff]  ;;  %v2564_v4 = vld [vmem:[%s2396_s12 + $0x58] sm:$0xff]  ;;  %v410_v27 = vsub.f32 %v2500_v47, %v2497_v46  ;;  %v412_v19 = vsub.f32 %v2528_v56, %v2525_v55 }
  0x18   : > { %850 = vmatprep.subr.bf16.mxu0 %v2151_v10  ;;  %v399_v57 = vpack.c.bf16 %v2519_v53, %v2512_v51  ;;  %v2547_v62 = vmul.f32 %v2533_v58, %v2536_v59  ;;  %v2568_v5 = vmul.f32 %v2553_v0, %v2556_v1  ;;  %v2172_v6 = vld [vmem:[%s3099_s2 + $0xc4] ss:$8 sps:$4 sm:$0xff]   ;;  %v2575_v7 = vmul.f32 %v2561_v3, %v2564_v4  ;;  %v2174_v8 = vld [vmem:[%s3099_s2 + $0xc0] ss:$8 sps:$4 sm:$0xff]   ;;  %v2177_v21 = vld [vmem:[%s3099_s2 + $0xd0] ss:$8 sps:$4 sm:$0xff]  }
  0x19   : > { %v2581_v9 = vld [vmem:[%s2404_s18 + $0x60] sm:$0xff]  ;;  %v2592_v15 = vld [vmem:[%s2396_s12 + $0x68] sm:$0xff]  ;;  %v2612_v23 = vld [vmem:[%s2396_s12 + $0x70] sm:$0xff]  ;;  %v413_v20 = vsub.f32 %v2536_v59, %v2533_v58  ;;  %v414_v32 = vsub.f32 %v2556_v1, %v2553_v0  ;;  %v415_v35 = vsub.f32 %v2564_v4, %v2561_v3 }
  0x1a   : > { %v400_v2 = vpack.c.bf16 %v2547_v62, %v2540_v60  ;;  %v2584_v10 = vld [vmem:[%s2396_s12 + $0x60] sm:$0xff] }
  0x1b   : > { %851 = vmatpush1.bf16.msra.mxu0 %v2153_v11  ;;  %v2596_v16 = vmul.f32 %v2581_v9, %v2584_v10  ;;  %v2250_v11 = vld [vmem:[%s3101_s4 + $0x64] ss:$8 sps:$4 sm:$0xff]   ;;  %v416_v42 = vsub.f32 %v2584_v10, %v2581_v9 }
  0x1c   : > { %852 = vmatprep.subr.bf16.mxu0 %v2154_v12  ;;  %v2589_v12 = vld [vmem:[%s2404_s18 + $0x68] sm:$0xff] }
  0x1d   : > { %v2603_v18 = vmul.f32 %v2589_v12, %v2592_v15  ;;  %v417_v44 = vsub.f32 %v2592_v15, %v2589_v12 }
  0x1f   : > { %853 = vmatpush1.bf16.msra.mxu0 %v2156_v17  ;;  %v2175_v17 = vld [vmem:[%s3099_s2 + $0xd4] ss:$8 sps:$4 sm:$0xff]   ;;  %v3107_v60 = vpack.c.bf16 %v2603_v18, %v2596_v16 }
  0x20   : > { %854 = vmatprep.subr.bf16.mxu0 %v2157_v22  ;;  %v2609_v22 = vld [vmem:[%s2404_s18 + $0x70] sm:$0xff] }
  0x21   : > { %v418_v51 = vsub.f32 %v2612_v23, %v2609_v22 }
  0x23   : > { %855 = vmatpush1.bf16.msra.mxu0 %v2159_v24  ;;  %v2183_v24 = vld [vmem:[%s3099_s2 + $0xf0] ss:$8 sps:$4 sm:$0xff]  }
  0x24   : > { %856 = vmatprep.subr.bf16.mxu0 %v2160_v33  ;;  %v2617_v33 = vld [vmem:[%s2404_s18 + $0x78] sm:$0xff] }
  0x27   : > { %857 = vmatpush1.bf16.msra.mxu0 %v2162_v36  ;;  %v2620_v36 = vld [vmem:[%s2396_s12 + $0x78] sm:$0xff] }
  0x28   : > { %858 = vmatprep.subr.bf16.mxu0 %v2163_v43  ;;  %v2624_v43 = vmul.f32 %v2609_v22, %v2612_v23  ;;  %v419_v53 = vsub.f32 %v2620_v36, %v2617_v33 }
  0x2b   : > { %859 = vmatpush1.bf16.msra.mxu0 %v2165_v45  ;;  %v2178_v45 = vld [vmem:[%s3099_s2 + $0xe4] ss:$8 sps:$4 sm:$0xff]  }
  0x2c   : > { %860 = vmatprep.subr.bf16.mxu0 %v2166_v52  ;;  %v2631_v52 = vmul.f32 %v2617_v33, %v2620_v36 }
  0x2e   : > { %v3108_v62 = vpack.c.bf16 %v2631_v52, %v2624_v43 }
  0x2f   : > { %861 = vmatpush1.bf16.msra.mxu0 %v2168_v54  ;;  %v2180_v54 = vld [vmem:[%s3099_s2 + $0xe0] ss:$8 sps:$4 sm:$0xff]  }
  0x30   : > { %862 = vmatprep.subr.bf16.mxu0 %v2169_v61  ;;  %v2181_v61 = vld [vmem:[%s3099_s2 + $0xf4] ss:$8 sps:$4 sm:$0xff]  }
  0x33   : > { %863 = vmatpush1.bf16.msra.mxu0 %v2171_v63  ;;  %v364_v63 = vpack.c.bf16 %v2413_v14, %v2410_v13  ;;  %v2240_v13 = vld [vmem:[%s3101_s4 + $0x20] ss:$8 sps:$4 sm:$0xff]   ;;  %v2241_v14 = vld [vmem:[%s3101_s4 + $0x34] ss:$8 sps:$4 sm:$0xff]  }
  0x34   : > { %864 = vmatprep.subr.bf16.mxu0 %v2172_v6  ;;  %v2232_v6 = vld [vmem:[%s3101_s4 + $0x4] ss:$8 sps:$4 sm:$0xff]  }
  0x35   : > { %1286 = vmatprep.subr.bf16.mxu1 %v2232_v6  ;;  %v373_v6 = vpack.c.bf16 %v2447_v30, %v2441_v28 }
  0x37   : > { %865 = vmatpush1.bf16.msra.mxu0 %v2174_v8  ;;  %v2234_v8 = vld [vmem:[%s3101_s4] ss:$8 sps:$4 sm:$0xff]  }
  0x38   : > { %866 = vmatprep.subr.bf16.mxu0 %v2175_v17  ;;  %v2235_v17 = vld [vmem:[%s3101_s4 + $0x14] ss:$8 sps:$4 sm:$0xff]   ;;  %1287 = vmatpush1.bf16.msra.mxu1 %v2234_v8 }
  0x39   : > { %1288 = vmatprep.subr.bf16.mxu1 %v2235_v17  ;;  %v2189_v8 = vld [vmem:[%s3099_s2 + $0x114] ss:$8 sps:$4 sm:$0xff]   ;;  %v2192_v17 = vld [vmem:[%s3099_s2 + $0x124] ss:$8 sps:$4 sm:$0xff]  }
  0x3b   : > { %867 = vmatpush1.bf16.msra.mxu0 %v2177_v21  ;;  %v2186_v21 = vld [vmem:[%s3099_s2 + $0x104] ss:$8 sps:$4 sm:$0xff]  }
  0x3c   : > { %868 = vmatprep.subr.bf16.mxu0 %v2178_v45  ;;  %v2237_v45 = vld [vmem:[%s3101_s4 + $0x10] ss:$8 sps:$4 sm:$0xff]  }
  0x3d   : > { %1289 = vmatpush1.bf16.msra.mxu1 %v2237_v45  ;;  %v2244_v45 = vld [vmem:[%s3101_s4 + $0x44] ss:$8 sps:$4 sm:$0xff]  }
  0x3f   : > { %869 = vmatpush1.bf16.msra.mxu0 %v2180_v54  ;;  %v2238_v54 = vld [vmem:[%s3101_s4 + $0x24] ss:$8 sps:$4 sm:$0xff]  }
  0x40   : > { %870 = vmatprep.subr.bf16.mxu0 %v2181_v61  ;;  %v2184_v61 = vld [vmem:[%s3099_s2 + $0x100] ss:$8 sps:$4 sm:$0xff]   ;;  %1290 = vmatprep.subr.bf16.mxu1 %v2238_v54 }
  0x41   : > { %1291 = vmatpush1.bf16.msra.mxu1 %v2240_v13  ;;  %v2190_v54 = vld [vmem:[%s3099_s2 + $0x120] ss:$8 sps:$4 sm:$0xff]   ;;  %v2247_v13 = vld [vmem:[%s3101_s4 + $0x54] ss:$8 sps:$4 sm:$0xff]  }
  0x42   : > { %1292 = vmatprep.subr.bf16.mxu1 %v2241_v14  ;;  %v2193_v14 = vld [vmem:[%s3099_s2 + $0x130] ss:$8 sps:$4 sm:$0xff]  }
  0x43   : > { %871 = vmatpush1.bf16.msra.mxu0 %v2183_v24  ;;  %v2187_v24 = vld [vmem:[%s3099_s2 + $0x110] ss:$8 sps:$4 sm:$0xff]  }
  0x44   : > { %953 = vmatprep.subr.bf16.mxu0 %v2186_v21  ;;  %v365_v21 = vpack.c.bf16 %v2450_v31, %v2444_v29 }
  0x46   : > { %873 = vmatmul.mubr.bf16.vlgmr.msra.gmra.mrb[0].mxu0 %v364_v63  ;;  %v2243_v63 = vld [vmem:[%s3101_s4 + $0x30] ss:$8 sps:$4 sm:$0xff]  }
  0x47   : > { %954 = vmatpush1.bf16.msra.mxu0 %v2184_v61  ;;  %882 = vmatprep.mubr.bf16.mxu0 %v373_v6  ;;  %v374_v61 = vpack.c.bf16 %v2477_v40, %v2469_v37  ;;  %v2195_v6 = vld [vmem:[%s3099_s2 + $0x134] ss:$8 sps:$4 sm:$0xff]  }
  0x48   : > { %955 = vmatprep.subr.bf16.mxu0 %v2189_v8  ;;  %v2246_v8 = vld [vmem:[%s3101_s4 + $0x40] ss:$8 sps:$4 sm:$0xff]   ;;  %1293 = vmatpush1.bf16.msra.mxu1 %v2243_v63 }
  0x49   : > { %1294 = vmatprep.subr.bf16.mxu1 %v2244_v45  ;;  %v2196_v63 = vld [vmem:[%s3099_s2 + $0x140] ss:$8 sps:$4 sm:$0xff]   ;;  %v2201_v45 = vld [vmem:[%s3099_s2 + $0x154] ss:$8 sps:$4 sm:$0xff]  }
  0x4b   : > { %956 = vmatpush1.bf16.msra.mxu0 %v2187_v24  ;;  %v2198_v24 = vld [vmem:[%s3099_s2 + $0x144] ss:$8 sps:$4 sm:$0xff]  }
  0x4c   : > { %957 = vmatprep.subr.bf16.mxu0 %v2192_v17  ;;  %v2249_v17 = vld [vmem:[%s3101_s4 + $0x50] ss:$8 sps:$4 sm:$0xff]   ;;  %1295 = vmatpush1.bf16.msra.mxu1 %v2246_v8 }
  0x4d   : > { %1296 = vmatprep.subr.bf16.mxu1 %v2247_v13  ;;  %v2199_v8 = vld [vmem:[%s3099_s2 + $0x150] ss:$8 sps:$4 sm:$0xff]   ;;  %v2204_v13 = vld [vmem:[%s3099_s2 + $0x164] ss:$8 sps:$4 sm:$0xff]  }
  0x4e   : > { %883 = vmatmul.mubr.bf16.gmra.mrb[4].mxu0 %v365_v21  ;;  %v366_v21 = vpack.c.bf16 %v2480_v41, %v2472_v38 }
  0x4f   : > { %958 = vmatpush1.bf16.msra.mxu0 %v2190_v54  ;;  %892 = vmatprep.mubr.bf16.mxu0 %v374_v61  ;;  %v375_v54 = vpack.c.bf16 %v2505_v49, %v2497_v46  ;;  %v2252_v61 = vld [vmem:[%s3101_s4 + $0x60] ss:$8 sps:$4 sm:$0xff]  }
  0x50   : > { %959 = vmatprep.subr.bf16.mxu0 %v2195_v6  ;;  %v2253_v6 = vld [vmem:[%s3101_s4 + $0x74] ss:$8 sps:$4 sm:$0xff]   ;;  %1297 = vmatpush1.bf16.msra.mxu1 %v2249_v17  ;;  %v2256_v17 = vld [vmem:[%s3101_s4 + $0x84] ss:$8 sps:$4 sm:$0xff]  }
  0x51   : > { %1298 = vmatprep.subr.bf16.mxu1 %v2250_v11  ;;  %v2202_v11 = vld [vmem:[%s3099_s2 + $0x160] ss:$8 sps:$4 sm:$0xff]  }
  0x53   : > { %960 = vmatpush1.bf16.msra.mxu0 %v2193_v14  ;;  %v2255_v14 = vld [vmem:[%s3101_s4 + $0x70] ss:$8 sps:$4 sm:$0xff]  }
  0x54   : > { %961 = vmatprep.subr.bf16.mxu0 %v2198_v24  ;;  %1299 = vmatpush1.bf16.msra.mxu1 %v2252_v61  ;;  %v367_v24 = vpack.c.bf16 %v2508_v50, %v2500_v47  ;;  %v2205_v61 = vld [vmem:[%s3099_s2 + $0x170] ss:$8 sps:$4 sm:$0xff]   ;;  %v431_v47 = vand.u32 2147483647, %v415_v35 }
  0x55   : > { %1300 = vmatprep.subr.bf16.mxu1 %v2253_v6  ;;  %v2210_v6 = vld [vmem:[%s3099_s2 + $0x184] ss:$8 sps:$4 sm:$0xff]  }
  0x56   : > { %893 = vmatmul.mubr.bf16.gmra.mrb[8].mxu0 %v366_v21  ;;  %v2207_v21 = vld [vmem:[%s3099_s2 + $0x174] ss:$8 sps:$4 sm:$0xff]  }
  0x57   : > { %962 = vmatpush1.bf16.msra.mxu0 %v2196_v63  ;;  %902 = vmatprep.mubr.bf16.mxu0 %v375_v54  ;;  %v376_v63 = vpack.c.bf16 %v2533_v58, %v2525_v55  ;;  %v2259_v54 = vld [vmem:[%s3101_s4 + $0x94] ss:$8 sps:$4 sm:$0xff]   ;;  %v435_v58 = vand.u32 2147483647, %v419_v53 }
  0x58   : > { %963 = vmatprep.subr.bf16.mxu0 %v2201_v45  ;;  %1301 = vmatpush1.bf16.msra.mxu1 %v2255_v14  ;;  %v2258_v45 = vld [vmem:[%s3101_s4 + $0x80] ss:$8 sps:$4 sm:$0xff]   ;;  %v2262_v14 = vld [vmem:[%s3101_s4 + $0xa4] ss:$8 sps:$4 sm:$0xff]  }
  0x59   : > { %1302 = vmatprep.subr.bf16.mxu1 %v2256_v17  ;;  %v377_v17 = vpack.c.bf16 %v2561_v3, %v2553_v0  ;;  %v2274_v0 = vld [vmem:[%s3101_s4 + $0xe4] ss:$8 sps:$4 sm:$0xff]   ;;  %v2279_v3 = vld [vmem:[%s3101_s4 + $0xf0] ss:$8 sps:$4 sm:$0xff]  }
  0x5b   : > { %964 = vmatpush1.bf16.msra.mxu0 %v2199_v8  ;;  %v2261_v8 = vld [vmem:[%s3101_s4 + $0x90] ss:$8 sps:$4 sm:$0xff]  }
  0x5c   : > { %965 = vmatprep.subr.bf16.mxu0 %v2204_v13  ;;  %1303 = vmatpush1.bf16.msra.mxu1 %v2258_v45  ;;  %v368_v13 = vpack.c.bf16 %v2536_v59, %v2528_v56  ;;  %v2211_v45 = vld [vmem:[%s3099_s2 + $0x190] ss:$8 sps:$4 sm:$0xff]   ;;  %v3106_v56 = vpack.c.bf16 %v2575_v7, %v2568_v5  ;;  %v510_v5 = vlaneseq }
  0x5d   : > { %1304 = vmatprep.subr.bf16.mxu1 %v2259_v54  ;;  %v2216_v54 = vld [vmem:[%s3099_s2 + $0x1a4] ss:$8 sps:$4 sm:$0xff]  }
  0x5e   : > { %903 = vmatmul.mubr.bf16.gmra.mrb[12].mxu0 %v367_v24  ;;  %v2208_v24 = vld [vmem:[%s3099_s2 + $0x180] ss:$8 sps:$4 sm:$0xff]   ;;  %v2924_v7 = vshrl.u32 %v510_v5, 7 }
  0x5f   : > { %966 = vmatpush1.bf16.msra.mxu0 %v2202_v11  ;;  %912 = vmatprep.mubr.bf16.mxu0 %v376_v63  ;;  %v2213_v11 = vld [vmem:[%s3099_s2 + $0x194] ss:$8 sps:$4 sm:$0xff]   ;;  %v2264_v63 = vld [vmem:[%s3101_s4 + $0xa0] ss:$8 sps:$4 sm:$0xff]  }
  0x60   : > { %967 = vmatprep.subr.bf16.mxu0 %v2207_v21  ;;  %1305 = vmatpush1.bf16.msra.mxu1 %v2261_v8  ;;  %v2265_v21 = vld [vmem:[%s3101_s4 + $0xb4] ss:$8 sps:$4 sm:$0xff]   ;;  %v2268_v8 = vld [vmem:[%s3101_s4 + $0xc4] ss:$8 sps:$4 sm:$0xff]  }
  0x61   : > { %1306 = vmatprep.subr.bf16.mxu1 %v2262_v14  ;;  %v378_v14 = vpack.c.bf16 %v2589_v12, %v2581_v9  ;;  %v512_v9 = vsub.s32 0, %v2924_v7  ;;  %v516_v12 = vsub.s32 1, %v2924_v7 }
  0x63   : > { %968 = vmatpush1.bf16.msra.mxu0 %v2205_v61  ;;  %v2267_v61 = vld [vmem:[%s3101_s4 + $0xb0] ss:$8 sps:$4 sm:$0xff]  }
  0x64   : > { %969 = vmatprep.subr.bf16.mxu0 %v2210_v6  ;;  %1307 = vmatpush1.bf16.msra.mxu1 %v2264_v63  ;;  %v369_v6 = vpack.c.bf16 %v2564_v4, %v2556_v1  ;;  %v2217_v63 = vld [vmem:[%s3099_s2 + $0x1b0] ss:$8 sps:$4 sm:$0xff]   ;;  %v2276_v1 = vld [vmem:[%s3101_s4 + $0xe0] ss:$8 sps:$4 sm:$0xff]  }
  0x65   : > { %1308 = vmatprep.subr.bf16.mxu1 %v2265_v21  ;;  %v2222_v21 = vld [vmem:[%s3099_s2 + $0x1c4] ss:$8 sps:$4 sm:$0xff]  }
  0x66   : > { %913 = vmatmul.mubr.bf16.gmra.mrb[16].mxu0 %v368_v13  ;;  %v2214_v13 = vld [vmem:[%s3099_s2 + $0x1a0] ss:$8 sps:$4 sm:$0xff]  }
  0x67   : > { %970 = vmatpush1.bf16.msra.mxu0 %v2208_v24  ;;  %922 = vmatprep.mubr.bf16.mxu0 %v377_v17  ;;  %v2219_v24 = vld [vmem:[%s3099_s2 + $0x1b4] ss:$8 sps:$4 sm:$0xff]   ;;  %v2270_v17 = vld [vmem:[%s3101_s4 + $0xc0] ss:$8 sps:$4 sm:$0xff]  }
  0x68   : > { %971 = vmatprep.subr.bf16.mxu0 %v2213_v11  ;;  %1309 = vmatpush1.bf16.msra.mxu1 %v2267_v61  ;;  %v2271_v11 = vld [vmem:[%s3101_s4 + $0xd4] ss:$8 sps:$4 sm:$0xff]   ;;  %v2220_v61 = vld [vmem:[%s3099_s2 + $0x1c0] ss:$8 sps:$4 sm:$0xff]  }
  0x69   : > { %1310 = vmatprep.subr.bf16.mxu1 %v2268_v8  ;;  %v2225_v8 = vld [vmem:[%s3099_s2 + $0x1d4] ss:$8 sps:$4 sm:$0xff]   ;;  %v2280_v4 = vld [vmem:[%s3103_s6 + $0x40] sm:$0xff]  }
  0x6b   : > { %972 = vmatpush1.bf16.msra.mxu0 %v2211_v45  ;;  %v2273_v45 = vld [vmem:[%s3101_s4 + $0xd0] ss:$8 sps:$4 sm:$0xff]  }
  0x6c   : > { %973 = vmatprep.subr.bf16.mxu0 %v2216_v54  ;;  %1311 = vmatpush1.bf16.msra.mxu1 %v2270_v17  ;;  %v370_v54 = vpack.c.bf16 %v2592_v15, %v2584_v10  ;;  %v2226_v17 = vld [vmem:[%s3099_s2 + $0x1e0] ss:$8 sps:$4 sm:$0xff]  }
  0x6d   : > { %1312 = vmatprep.subr.bf16.mxu1 %v2271_v11  ;;  %v406_v11 = vsub.f32 %v2444_v29, %v2441_v28  ;;  %v508_v10 = vld [vmem:[%s3100_s3] sm:$0x3] }
  0x6e   : > { %923 = vmatmul.mubr.bf16.gmra.mrb[20].mxu0 %v369_v6  ;;  %v379_v6 = vpack.c.bf16 %v2617_v33, %v2609_v22  ;;  %v2933_v15 = vrot.slane %v508_v10, %v512_v9  ;;  %v2937_v18 = vrot.slane %v508_v10, %v516_v12 }
  0x6f   : > { %974 = vmatpush1.bf16.msra.mxu0 %v2214_v13  ;;  %932 = vmatprep.mubr.bf16.mxu0 %v378_v14  ;;  %v2223_v13 = vld [vmem:[%s3099_s2 + $0x1d0] ss:$8 sps:$4 sm:$0xff]   ;;  %v2228_v14 = vld [vmem:[%s3099_s2 + $0x1e4] ss:$8 sps:$4 sm:$0xff]  }
  0x70   : > { %975 = vmatprep.subr.bf16.mxu0 %v2219_v24  ;;  %1313 = vmatpush1.bf16.msra.mxu1 %v2273_v45  ;;  %v371_v24 = vpack.c.bf16 %v2620_v36, %v2612_v23  ;;  %v2229_v45 = vld [vmem:[%s3099_s2 + $0x1f0] ss:$8 sps:$4 sm:$0xff]  }
  0x71   : > { %1314 = vmatprep.subr.bf16.mxu1 %v2274_v0  ;;  %v2293_v0 = vld [vmem:[%s3103_s6 + $0x30] sm:$0xff]  }
  0x73   : > { %976 = vmatpush1.bf16.msra.mxu0 %v2217_v63  ;;  %v407_v63 = vsub.f32 %v2450_v31, %v2447_v30  ;;  %v408_v30 = vsub.f32 %v2472_v38, %v2469_v37  ;;  %v409_v31 = vsub.f32 %v2480_v41, %v2477_v40  ;;  %v426_v37 = vand.u32 2147483647, %v410_v27  ;;  %v2285_v27 = vld [vmem:[%s3103_s6 + $0x10] sm:$0xff]  }
  0x74   : > { %977 = vmatprep.subr.bf16.mxu0 %v2222_v21  ;;  %v2231_v21 = vld [vmem:[%s3099_s2 + $0x1f4] ss:$8 sps:$4 sm:$0xff]   ;;  %v429_v41 = vand.u32 2147483647, %v413_v20  ;;  %1315 = vmatpush1.bf16.msra.mxu1 %v2276_v1 }
  0x75   : > { %v423_v28 = vand.u32 2147483647, %v407_v63 }
  0x76   : > { %933 = vmatmul.mubr.bf16.gmra.mrb[24].mxu0 %v370_v54  ;;  %v422_v54 = vand.u32 2147483647, %v406_v11 }
  0x77   : > { %978 = vmatpush1.bf16.msra.mxu0 %v2220_v61  ;;  %942 = vmatprep.mubr.bf16.mxu0 %v379_v6  ;;  %v424_v61 = vand.u32 2147483647, %v408_v30  ;;  %v425_v6 = vand.u32 2147483647, %v409_v31  ;;  %v2284_v30 = vld [vmem:[%s3103_s6 + $0x50] sm:$0xff]  }
  0x78   : > { %979 = vmatprep.subr.bf16.mxu0 %v2225_v8  ;;  %v437_v29 = vpack.c.bf16 %v423_v28, %v422_v54 }
  0x79   : > { %v438_v26 = vpack.c.bf16 %v425_v6, %v424_v61 }
  0x7b   : > { %980 = vmatpush1.bf16.msra.mxu0 %v2223_v13 }
  0x7c   : > { %981 = vmatprep.subr.bf16.mxu0 %v2228_v14 }
  0x7e   : > { %943 = vmatmul.mubr.bf16.gmra.mrb[28].mxu0 %v371_v24  ;;  %v2281_v24 = vld [vmem:[%s3103_s6] sm:$0xff]  }
  0x7f   : > { %982 = vmatpush1.bf16.msra.mxu0 %v2226_v17  ;;  %985 = vmatprep.mubr.bf16.mxu0 %v436_v34  ;;  %v411_v34 = vsub.f32 %v2508_v50, %v2505_v49  ;;  %v433_v50 = vand.u32 2147483647, %v417_v44  ;;  %v2282_v17 = vld [vmem:[%s3103_s6 + $0x48] sm:$0xff]  }
  0x80   : > { %983 = vmatprep.subr.bf16.mxu0 %v2231_v21 }
  0x81   : > { %v427_v38 = vand.u32 2147483647, %v411_v34  ;;  %v2286_v34 = vld [vmem:[%s3103_s6 + $0x58] sm:$0xff]  }
  0x83   : > { %984 = vmatpush1.bf16.msra.mxu0 %v2229_v45  ;;  %v439_v40 = vpack.c.bf16 %v427_v38, %v426_v37  ;;  %v2283_v45 = vld [vmem:[%s3103_s6 + $0x8] sm:$0xff]  }
  0x86   : > { %986 = vmatmul.mubr.bf16.vlgmr.msra.gmra.mrb[0].mxu0 %v396_v25  ;;  %v428_v25 = vand.u32 2147483647, %v412_v19  ;;  %v2287_v19 = vld [vmem:[%s3103_s6 + $0x18] sm:$0xff]  }
  0x87   : > { %995 = vmatprep.mubr.bf16.mxu0 %v437_v29 }
  0x88   : > { %v440_v46 = vpack.c.bf16 %v429_v41, %v428_v25 }
  0x8e   : > { %996 = vmatmul.mubr.bf16.gmra.mrb[4].mxu0 %v397_v39  ;;  %v430_v39 = vand.u32 2147483647, %v414_v32 }
  0x8f   : > { %1005 = vmatprep.mubr.bf16.mxu0 %v438_v26 }
  0x90   : > { %v441_v49 = vpack.c.bf16 %v431_v47, %v430_v39 }
  0x96   : > { %1006 = vmatmul.mubr.bf16.gmra.mrb[8].mxu0 %v398_v48  ;;  %v432_v48 = vand.u32 2147483647, %v416_v42  ;;  %v2290_v42 = vld [vmem:[%s3103_s6 + $0x68] sm:$0xff]  }
  0x97   : > { %1015 = vmatprep.mubr.bf16.mxu0 %v439_v40 }
  0x98   : > { %v442_v55 = vpack.c.bf16 %v433_v50, %v432_v48 }
  0x9e   : > { %1016 = vmatmul.mubr.bf16.gmra.mrb[12].mxu0 %v399_v57  ;;  %v434_v57 = vand.u32 2147483647, %v418_v51 }
  0x9f   : > { %1025 = vmatprep.mubr.bf16.mxu0 %v440_v46  ;;  %v2288_v46 = vld [vmem:[%s3103_s6 + $0x60] sm:$0xff]  }
  0xa0   : > { %v443_v59 = vpack.c.bf16 %v435_v58, %v434_v57  ;;  %v2292_v57 = vld [vmem:[%s3103_s6 + $0x70] sm:$0xff]  }
  0xa6   : > { %1026 = vmatmul.mubr.bf16.gmra.mrb[16].mxu0 %v400_v2  ;;  %v2277_v2 = vld [vmem:[%s3101_s4 + $0xf4] ss:$8 sps:$4 sm:$0xff]  }
  0xa7   : > { %1035 = vmatprep.mubr.bf16.mxu0 %v441_v49  ;;  %1316 = vmatprep.subr.bf16.mxu1 %v2277_v2  ;;  %v2289_v49 = vld [vmem:[%s3103_s6 + $0x20] sm:$0xff]  }
  0xa8   : > { %1317 = vmatpush1.bf16.msra.mxu1 %v2279_v3 }
  0xa9   : > { %2000 = vmatprep.subr.bf16.mxu1 %v2280_v4 }
  0xae   : > { %1036 = vmatmul.mubr.bf16.gmra.mrb[20].mxu0 %v3106_v56 }
  0xaf   : > { %1045 = vmatprep.mubr.bf16.mxu0 %v442_v55  ;;  %v2291_v55 = vld [vmem:[%s3103_s6 + $0x28] sm:$0xff]  }
  0xb6   : > { %1046 = vmatmul.mubr.bf16.gmra.mrb[24].mxu0 %v3107_v60 }
  0xb7   : > { %1055 = vmatprep.mubr.bf16.mxu0 %v443_v59 }
  0xbe   : > { %1056 = vmatmul.mubr.bf16.gmra.mrb[28].mxu0 %v3108_v62 }
 0x159   : > { %v987_v16 = vpop.f32.mrb[0].mxu0 }
 0x15a   : > { %v989_v22 = vpop.f32.mrb[1].mxu0  ;;  %v2064_v33 = vadd.f32 %v987_v16, %v2933_v15 }
 0x15b   : > { %v991_v23 = vpop.f32.mrb[2].mxu0  ;;  %v2065_v52 = vadd.f32 %v989_v22, %v2937_v18 }
 0x15c   : > { %v2066_v36 = vadd.f32 %v991_v23, %v2933_v15  ;;  %v993_v43 = vpop.f32.mrb[3].mxu0 }
 0x15d   : > { %v2067_v8 = vadd.f32 %v993_v43, %v2937_v18 }
 0x15e   : > { %v1066_v13 = vpack.c.bf16 %v2066_v36, %v2064_v33 }
 0x15f   : > { %v1067_v14 = vpack.c.bf16 %v2067_v8, %v2065_v52 }
 0x161   : > { %v997_v11 = vpop.f32.mrb[4].mxu0  ;;  %1318 = vmatprep.mubr.bf16.mxu1 %v1067_v14 }
 0x162   : > { %v999_v63 = vpop.f32.mrb[5].mxu0  ;;  %1319 = vmatmul.mubr.bf16.vlgmr.msra.gmra.mrb[0].mxu1 %v1066_v13  ;;  %v2068_v54 = vadd.f32 %v997_v11, %v2933_v15 }
 0x163   : > { %v1001_v21 = vpop.f32.mrb[6].mxu0  ;;  %2001 = vmatpush3.bf16.msra.mxu1 %v2281_v24  ;;  %v2069_v31 = vadd.f32 %v999_v63, %v2937_v18 }
 0x164   : > { %v2070_v28 = vadd.f32 %v1001_v21, %v2933_v15  ;;  %v1003_v29 = vpop.f32.mrb[7].mxu0  ;;  %2002 = vmatprep.subr.bf16.mxu1 %v2282_v17 }
 0x165   : > { %v2071_v61 = vadd.f32 %v1003_v29, %v2937_v18 }
 0x166   : > { %v1068_v6 = vpack.c.bf16 %v2070_v28, %v2068_v54 }
 0x167   : > { %v1069_v26 = vpack.c.bf16 %v2071_v61, %v2069_v31  ;;  %2003 = vmatpush3.bf16.msra.mxu1 %v2283_v45 }
 0x168   : > { %2004 = vmatprep.subr.bf16.mxu1 %v2284_v30 }
 0x169   : > { %v1007_v37 = vpop.f32.mrb[8].mxu0  ;;  %1328 = vmatprep.mubr.bf16.mxu1 %v1069_v26 }
 0x16a   : > { %v1009_v38 = vpop.f32.mrb[9].mxu0  ;;  %1329 = vmatmul.mubr.bf16.gmra.mrb[4].mxu1 %v1068_v6  ;;  %v2072_v20 = vadd.f32 %v1007_v37, %v2933_v15 }
 0x16b   : > { %v1011_v40 = vpop.f32.mrb[10].mxu0  ;;  %2005 = vmatpush3.bf16.msra.mxu1 %v2285_v27  ;;  %v2073_v32 = vadd.f32 %v1009_v38, %v2937_v18 }
 0x16c   : > { %v2074_v25 = vadd.f32 %v1011_v40, %v2933_v15  ;;  %v1013_v41 = vpop.f32.mrb[11].mxu0  ;;  %2006 = vmatprep.subr.bf16.mxu1 %v2286_v34 }
 0x16d   : > { %v2075_v35 = vadd.f32 %v1013_v41, %v2937_v18 }
 0x16e   : > { %v1070_v39 = vpack.c.bf16 %v2074_v25, %v2072_v20 }
 0x16f   : > { %v1071_v47 = vpack.c.bf16 %v2075_v35, %v2073_v32  ;;  %2007 = vmatpush3.bf16.msra.mxu1 %v2287_v19  ;;  %v2294_v32 = vld [vmem:[%s3103_s6 + $0x78] sm:$0xff]  }
 0x170   : > { %2008 = vmatprep.subr.bf16.mxu1 %v2288_v46  ;;  %v2295_v35 = vld [vmem:[%s3103_s6 + $0x38] sm:$0xff]  }
 0x171   : > { %v1017_v44 = vpop.f32.mrb[12].mxu0  ;;  %1338 = vmatprep.mubr.bf16.mxu1 %v1071_v47 }
 0x172   : > { %v1019_v48 = vpop.f32.mrb[13].mxu0  ;;  %1339 = vmatmul.mubr.bf16.gmra.mrb[8].mxu1 %v1070_v39  ;;  %v2076_v51 = vadd.f32 %v1017_v44, %v2933_v15 }
 0x173   : > { %v1021_v50 = vpop.f32.mrb[14].mxu0  ;;  %2009 = vmatpush3.bf16.msra.mxu1 %v2289_v49  ;;  %v2077_v58 = vadd.f32 %v1019_v48, %v2937_v18 }
 0x174   : > { %v2078_v53 = vadd.f32 %v1021_v50, %v2933_v15  ;;  %v1023_v56 = vpop.f32.mrb[15].mxu0  ;;  %2010 = vmatprep.subr.bf16.mxu1 %v2290_v42 }
 0x175   : > { %v2079_v59 = vadd.f32 %v1023_v56, %v2937_v18 }
 0x176   : > { %v1072_v60 = vpack.c.bf16 %v2078_v53, %v2076_v51 }
 0x177   : > { %v1073_v62 = vpack.c.bf16 %v2079_v59, %v2077_v58  ;;  %2011 = vmatpush3.bf16.msra.mxu1 %v2291_v55 }
 0x178   : > { %2012 = vmatprep.subr.bf16.mxu1 %v2292_v57 }
 0x179   : > { %v1027_v1 = vpop.f32.mrb[16].mxu0  ;;  %1348 = vmatprep.mubr.bf16.mxu1 %v1073_v62 }
 0x17a   : > { %v1029_v2 = vpop.f32.mrb[17].mxu0  ;;  %1349 = vmatmul.mubr.bf16.gmra.mrb[12].mxu1 %v1072_v60  ;;  %v2080_v4 = vadd.f32 %v1027_v1, %v2933_v15 }
 0x17b   : > { %v1031_v3 = vpop.f32.mrb[18].mxu0  ;;  %2013 = vmatpush3.bf16.msra.mxu1 %v2293_v0  ;;  %v2081_v16 = vadd.f32 %v1029_v2, %v2937_v18 }
 0x17c   : > { %v2082_v5 = vadd.f32 %v1031_v3, %v2933_v15  ;;  %v1033_v10 = vpop.f32.mrb[19].mxu0  ;;  %2014 = vmatprep.subr.bf16.mxu1 %v2294_v32 }
 0x17d   : > { %v2083_v22 = vadd.f32 %v1033_v10, %v2937_v18 }
 0x17e   : > { %v1074_v23 = vpack.c.bf16 %v2082_v5, %v2080_v4 }
 0x17f   : > { %v1075_v33 = vpack.c.bf16 %v2083_v22, %v2081_v16  ;;  %2015 = vmatpush3.bf16.msra.mxu1 %v2295_v35 }
 0x181   : > { %v1037_v36 = vpop.f32.mrb[20].mxu0  ;;  %1358 = vmatprep.mubr.bf16.mxu1 %v1075_v33 }
 0x182   : > { %v1039_v43 = vpop.f32.mrb[21].mxu0  ;;  %1359 = vmatmul.mubr.bf16.gmra.mrb[16].mxu1 %v1074_v23  ;;  %v2084_v8 = vadd.f32 %v1037_v36, %v2933_v15 }
 0x183   : > { %v1041_v52 = vpop.f32.mrb[22].mxu0  ;;  %v2085_v24 = vadd.f32 %v1039_v43, %v2937_v18 }
 0x184   : > { %v2086_v13 = vadd.f32 %v1041_v52, %v2933_v15  ;;  %v1043_v14 = vpop.f32.mrb[23].mxu0 }
 0x185   : > { %v2087_v17 = vadd.f32 %v1043_v14, %v2937_v18 }
 0x186   : > { %v1076_v11 = vpack.c.bf16 %v2086_v13, %v2084_v8 }
 0x187   : > { %v1077_v63 = vpack.c.bf16 %v2087_v17, %v2085_v24 }
 0x189   : > { %v1047_v21 = vpop.f32.mrb[24].mxu0  ;;  %1368 = vmatprep.mubr.bf16.mxu1 %v1077_v63 }
 0x18a   : > { %v1049_v45 = vpop.f32.mrb[25].mxu0  ;;  %1369 = vmatmul.mubr.bf16.gmra.mrb[20].mxu1 %v1076_v11  ;;  %v2088_v28 = vadd.f32 %v1047_v21, %v2933_v15 }
 0x18b   : > { %v1051_v54 = vpop.f32.mrb[26].mxu0  ;;  %v2089_v31 = vadd.f32 %v1049_v45, %v2937_v18 }
 0x18c   : > { %v2090_v29 = vadd.f32 %v1051_v54, %v2933_v15  ;;  %v1053_v30 = vpop.f32.mrb[27].mxu0 }
 0x18d   : > { %v2091_v61 = vadd.f32 %v1053_v30, %v2937_v18 }
 0x18e   : > { %v1078_v6 = vpack.c.bf16 %v2090_v29, %v2088_v28 }
 0x18f   : > { %v1079_v26 = vpack.c.bf16 %v2091_v61, %v2089_v31 }
 0x191   : > { %v1057_v27 = vpop.f32.mrb[28].mxu0  ;;  %1378 = vmatprep.mubr.bf16.mxu1 %v1079_v26 }
 0x192   : > { %v1059_v34 = vpop.f32.mrb[29].mxu0  ;;  %1379 = vmatmul.mubr.bf16.gmra.mrb[24].mxu1 %v1078_v6  ;;  %v2092_v38 = vadd.f32 %v1057_v27, %v2933_v15 }
 0x193   : > { %v1061_v37 = vpop.f32.mrb[30].mxu0  ;;  %v2093_v20 = vadd.f32 %v1059_v34, %v2937_v18 }
 0x194   : > { %v2094_v40 = vadd.f32 %v1061_v37, %v2933_v15  ;;  %v1063_v19 = vpop.f32.mrb[31].mxu0  ;;  %v1114_v15 = vld [vmem:[%s3102_s5] sm:$0x3] }
 0x195   : > { %v2095_v25 = vadd.f32 %v1063_v19, %v2937_v18  ;;  %v3021_v18 = vrot.slane %v1114_v15, %v512_v9  ;;  %v3025_v47 = vrot.slane %v1114_v15, %v516_v12 }
 0x196   : > { %v1080_v41 = vpack.c.bf16 %v2094_v40, %v2092_v38 }
 0x197   : > { %v1081_v46 = vpack.c.bf16 %v2095_v25, %v2093_v20 }
 0x199   : > { %1388 = vmatprep.mubr.bf16.mxu1 %v1081_v46 }
 0x19a   : > { %1389 = vmatmul.mubr.bf16.gmra.mrb[28].mxu1 %v1080_v41 }
 0x235   : > { %v1320_v39 = vpop.f32.mrb[0].mxu1 }
 0x236   : > { %v1322_v49 = vpop.f32.mrb[1].mxu1  ;;  %v1321_v44 = vadd.f32 %v1320_v39, %v3021_v18 }
 0x237   : > { %v1324_v42 = vpop.f32.mrb[2].mxu1  ;;  %v1323_v55 = vadd.f32 %v1322_v49, %v3025_v47 }
 0x238   : > { %v1325_v48 = vadd.f32 %v1324_v42, %v3021_v18  ;;  %v1326_v50 = vpop.f32.mrb[3].mxu1 }
 0x239   : > { %v1327_v51 = vadd.f32 %v1326_v50, %v3025_v47 }
 0x23a   : > { %v1399_v53 = vpack.c.bf16 %v1325_v48, %v1321_v44 }
 0x23b   : > { %v1400_v56 = vpack.c.bf16 %v1327_v51, %v1323_v55 }
 0x23d   : > { %v1330_v9 = vpop.f32.mrb[4].mxu1  ;;  %1582 = vmatprep.mubr.bf16.mxu1 %v1400_v56 }
 0x23e   : > { %v1332_v57 = vpop.f32.mrb[5].mxu1  ;;  %1583 = vmatmul.mubr.bf16.vlgmr.msra.gmra.mrb[32].mxu1 %v1399_v53  ;;  %v1331_v12 = vadd.f32 %v1330_v9, %v3021_v18 }
 0x23f   : > { %v1334_v7 = vpop.f32.mrb[6].mxu1  ;;  %v1333_v60 = vadd.f32 %v1332_v57, %v3025_v47 }
 0x240   : > { %v1335_v58 = vadd.f32 %v1334_v7, %v3021_v18  ;;  %v1336_v59 = vpop.f32.mrb[7].mxu1 }
 0x241   : > { %v1337_v62 = vadd.f32 %v1336_v59, %v3025_v47 }
 0x242   : > { %v1401_v0 = vpack.c.bf16 %v1335_v58, %v1331_v12 }
 0x243   : > { %v1402_v1 = vpack.c.bf16 %v1337_v62, %v1333_v60 }
 0x245   : > { %v1340_v2 = vpop.f32.mrb[8].mxu1  ;;  %1590 = vmatprep.mubr.bf16.mxu1 %v1402_v1 }
 0x246   : > { %v1342_v3 = vpop.f32.mrb[9].mxu1  ;;  %1591 = vmatmul.mubr.bf16.gmra.mrb[36].mxu1 %v1401_v0  ;;  %v1341_v5 = vadd.f32 %v1340_v2, %v3021_v18 }
 0x247   : > { %v1344_v4 = vpop.f32.mrb[10].mxu1  ;;  %v1343_v22 = vadd.f32 %v1342_v3, %v3025_v47 }
 0x248   : > { %v1345_v10 = vadd.f32 %v1344_v4, %v3021_v18  ;;  %v1346_v16 = vpop.f32.mrb[11].mxu1  ;;  %v3062_v4 = vld [vmem:[%s3104_s7] ss:$0 sm:$0xff] }
 0x249   : > { %v1347_v23 = vadd.f32 %v1346_v16, %v3025_v47 }
 0x24a   : > { %v1403_v33 = vpack.c.bf16 %v1345_v10, %v1341_v5 }
 0x24b   : > { %v1404_v36 = vpack.c.bf16 %v1347_v23, %v1343_v22 }
 0x24d   : > { %v1350_v43 = vpop.f32.mrb[12].mxu1  ;;  %1598 = vmatprep.mubr.bf16.mxu1 %v1404_v36 }
 0x24e   : > { %v1352_v52 = vpop.f32.mrb[13].mxu1  ;;  %1599 = vmatmul.mubr.bf16.gmra.mrb[40].mxu1 %v1403_v33  ;;  %v1351_v13 = vadd.f32 %v1350_v43, %v3021_v18 }
 0x24f   : > { %v1354_v8 = vpop.f32.mrb[14].mxu1  ;;  %v1353_v17 = vadd.f32 %v1352_v52, %v3025_v47 }
 0x250   : > { %v1355_v14 = vadd.f32 %v1354_v8, %v3021_v18  ;;  %v1356_v24 = vpop.f32.mrb[15].mxu1 }
 0x251   : > { %v1357_v11 = vadd.f32 %v1356_v24, %v3025_v47 }
 0x252   : > { %v1405_v63 = vpack.c.bf16 %v1355_v14, %v1351_v13 }
 0x253   : > { %v1406_v21 = vpack.c.bf16 %v1357_v11, %v1353_v17 }
 0x255   : > { %v1360_v45 = vpop.f32.mrb[16].mxu1  ;;  %1606 = vmatprep.mubr.bf16.mxu1 %v1406_v21 }
 0x256   : > { %v1362_v54 = vpop.f32.mrb[17].mxu1  ;;  %1607 = vmatmul.mubr.bf16.gmra.mrb[44].mxu1 %v1405_v63  ;;  %v1361_v29 = vadd.f32 %v1360_v45, %v3021_v18 }
 0x257   : > { %v1364_v28 = vpop.f32.mrb[18].mxu1  ;;  %v1363_v61 = vadd.f32 %v1362_v54, %v3025_v47 }
 0x258   : > { %v1365_v30 = vadd.f32 %v1364_v28, %v3021_v18  ;;  %v1366_v31 = vpop.f32.mrb[19].mxu1 }
 0x259   : > { %v1367_v6 = vadd.f32 %v1366_v31, %v3025_v47 }
 0x25a   : > { %v1407_v26 = vpack.c.bf16 %v1365_v30, %v1361_v29 }
 0x25b   : > { %v1408_v27 = vpack.c.bf16 %v1367_v6, %v1363_v61 }
 0x25d   : > { %v1370_v34 = vpop.f32.mrb[20].mxu1  ;;  %1614 = vmatprep.mubr.bf16.mxu1 %v1408_v27 }
 0x25e   : > { %v1372_v37 = vpop.f32.mrb[21].mxu1  ;;  %1615 = vmatmul.mubr.bf16.gmra.mrb[48].mxu1 %v1407_v26  ;;  %v1371_v40 = vadd.f32 %v1370_v34, %v3021_v18 }
 0x25f   : > { %v1374_v38 = vpop.f32.mrb[22].mxu1  ;;  %v1373_v25 = vadd.f32 %v1372_v37, %v3025_v47 }
 0x260   : > { %v1375_v19 = vadd.f32 %v1374_v38, %v3021_v18  ;;  %v1376_v20 = vpop.f32.mrb[23].mxu1 }
 0x261   : > { %v1377_v41 = vadd.f32 %v1376_v20, %v3025_v47 }
 0x262   : > { %v1409_v46 = vpack.c.bf16 %v1375_v19, %v1371_v40 }
 0x263   : > { %v1410_v32 = vpack.c.bf16 %v1377_v41, %v1373_v25 }
 0x265   : > { %v1380_v35 = vpop.f32.mrb[24].mxu1  ;;  %1622 = vmatprep.mubr.bf16.mxu1 %v1410_v32 }
 0x266   : > { %v1382_v15 = vpop.f32.mrb[25].mxu1  ;;  %1623 = vmatmul.mubr.bf16.gmra.mrb[52].mxu1 %v1409_v46  ;;  %v1381_v49 = vadd.f32 %v1380_v35, %v3021_v18 }
 0x267   : > { %v1384_v39 = vpop.f32.mrb[26].mxu1  ;;  %v1383_v48 = vadd.f32 %v1382_v15, %v3025_v47 }
 0x268   : > { %v1385_v42 = vadd.f32 %v1384_v39, %v3021_v18  ;;  %v1386_v44 = vpop.f32.mrb[27].mxu1 }
 0x269   : > { %v1387_v50 = vadd.f32 %v1386_v44, %v3025_v47 }
 0x26a   : > { %v1411_v55 = vpack.c.bf16 %v1385_v42, %v1381_v49 }
 0x26b   : > { %v1412_v51 = vpack.c.bf16 %v1387_v50, %v1383_v48 }
 0x26d   : > { %v1390_v53 = vpop.f32.mrb[28].mxu1  ;;  %1630 = vmatprep.mubr.bf16.mxu1 %v1412_v51 }
 0x26e   : > { %v1392_v56 = vpop.f32.mrb[29].mxu1  ;;  %1631 = vmatmul.mubr.bf16.gmra.mrb[56].mxu1 %v1411_v55  ;;  %v1391_v57 = vadd.f32 %v1390_v53, %v3021_v18 }
 0x26f   : > { %v1394_v9 = vpop.f32.mrb[30].mxu1  ;;  %v1393_v58 = vadd.f32 %v1392_v56, %v3025_v47 }
 0x270   : > { %v1395_v7 = vadd.f32 %v1394_v9, %v3021_v18  ;;  %v1396_v12 = vpop.f32.mrb[31].mxu1 }
 0x271   : > { %v1397_v59 = vadd.f32 %v1396_v12, %v3025_v47 }
 0x272   : > { %v1413_v60 = vpack.c.bf16 %v1395_v7, %v1391_v57 }
 0x273   : > { %v1414_v62 = vpack.c.bf16 %v1397_v59, %v1393_v58 }
 0x275   : > { %1638 = vmatprep.mubr.bf16.mxu1 %v1414_v62 }
 0x276   : > { %1639 = vmatmul.mubr.bf16.gmra.mrb[60].mxu1 %v1413_v60 }
 0x311   : > { %v2016_v0 = vpop.f32.mrb[32].mxu1 }
 0x312   : > { %v2017_v1 = vpop.f32.mrb[33].mxu1 }
 0x313   : > { %v2018_v2 = vadd.f32 %v2017_v1, %v2016_v0  ;;  %v2019_v3 = vpop.f32.mrb[34].mxu1 }
 0x314   : > { %v2020_v5 = vpop.f32.mrb[35].mxu1 }
 0x315   : > { %v2021_v18 = vadd.f32 %v2020_v5, %v2019_v3  ;;  %v1585_v10 = vadd.f32 %v2018_v2, %v3062_v4 }
 0x317   : > { %v1588_v47 = vadd.f32 %v2021_v18, %v3062_v4 }
 0x319   : > { %v1956_v16 = vpack.c.bf16 %v1588_v47, %v1585_v10  ;;  %v2022_v22 = vpop.f32.mrb[36].mxu1 }
 0x31a   : > { %v2023_v23 = vpop.f32.mrb[37].mxu1 }
 0x31b   : > { %1957 = vst [vmem:[%s3070_s9] sm:$0xff] %v1956_v16   ;;  %v2024_v33 = vadd.f32 %v2023_v23, %v2022_v22  ;;  %v2025_v36 = vpop.f32.mrb[38].mxu1 }
 0x31c   : > { %v2026_v43 = vpop.f32.mrb[39].mxu1 }
 0x31d   : > { %v2027_v52 = vadd.f32 %v2026_v43, %v2025_v36  ;;  %v1593_v8 = vadd.f32 %v2024_v33, %v3062_v4 }
 0x31f   : > { %v1596_v13 = vadd.f32 %v2027_v52, %v3062_v4 }
 0x321   : > { %v1961_v14 = vpack.c.bf16 %v1596_v13, %v1593_v8  ;;  %v2028_v24 = vpop.f32.mrb[40].mxu1 }
 0x322   : > { %v2029_v17 = vpop.f32.mrb[41].mxu1 }
 0x323   : > { %1993 = vst [vmem:[%s3070_s9 + $0x8] sm:$0xff] %v1961_v14   ;;  %v2030_v11 = vadd.f32 %v2029_v17, %v2028_v24  ;;  %v2031_v63 = vpop.f32.mrb[42].mxu1 }
 0x324   : > { %v2032_v21 = vpop.f32.mrb[43].mxu1 }
 0x325   : > { %v2033_v45 = vadd.f32 %v2032_v21, %v2031_v63  ;;  %v1601_v54 = vadd.f32 %v2030_v11, %v3062_v4 }
 0x327   : > { %v1604_v28 = vadd.f32 %v2033_v45, %v3062_v4 }
 0x329   : > { %v1966_v29 = vpack.c.bf16 %v1604_v28, %v1601_v54  ;;  %v2034_v30 = vpop.f32.mrb[44].mxu1 }
 0x32a   : > { %v2035_v31 = vpop.f32.mrb[45].mxu1 }
 0x32b   : > { %1994 = vst [vmem:[%s3070_s9 + $0x10] sm:$0xff] %v1966_v29   ;;  %v2036_v61 = vadd.f32 %v2035_v31, %v2034_v30  ;;  %v2037_v6 = vpop.f32.mrb[46].mxu1 }
 0x32c   : > { %v2038_v26 = vpop.f32.mrb[47].mxu1 }
 0x32d   : > { %v2039_v27 = vadd.f32 %v2038_v26, %v2037_v6  ;;  %v1609_v34 = vadd.f32 %v2036_v61, %v3062_v4 }
 0x32f   : > { %v1612_v37 = vadd.f32 %v2039_v27, %v3062_v4 }
 0x331   : > { %v1971_v38 = vpack.c.bf16 %v1612_v37, %v1609_v34  ;;  %v2040_v40 = vpop.f32.mrb[48].mxu1 }
 0x332   : > { %v2041_v19 = vpop.f32.mrb[49].mxu1 }
 0x333   : > { %1995 = vst [vmem:[%s3070_s9 + $0x18] sm:$0xff] %v1971_v38   ;;  %v2042_v20 = vadd.f32 %v2041_v19, %v2040_v40  ;;  %v2043_v25 = vpop.f32.mrb[50].mxu1 }
 0x334   : > { %v2044_v41 = vpop.f32.mrb[51].mxu1 }
 0x335   : > { %v2045_v46 = vadd.f32 %v2044_v41, %v2043_v25  ;;  %v1617_v32 = vadd.f32 %v2042_v20, %v3062_v4 }
 0x337   : > { %v1620_v35 = vadd.f32 %v2045_v46, %v3062_v4 }
 0x339   : > { %v1976_v15 = vpack.c.bf16 %v1620_v35, %v1617_v32  ;;  %v2046_v39 = vpop.f32.mrb[52].mxu1 }
 0x33a   : > { %v2047_v49 = vpop.f32.mrb[53].mxu1 }
 0x33b   : > { %1996 = vst [vmem:[%s3070_s9 + $0x20] sm:$0xff] %v1976_v15   ;;  %v2048_v42 = vadd.f32 %v2047_v49, %v2046_v39  ;;  %v2049_v44 = vpop.f32.mrb[54].mxu1 }
 0x33c   : > { %v2050_v48 = vpop.f32.mrb[55].mxu1 }
 0x33d   : > { %v2051_v50 = vadd.f32 %v2050_v48, %v2049_v44  ;;  %v1625_v55 = vadd.f32 %v2048_v42, %v3062_v4 }
 0x33f   : > { %v1628_v51 = vadd.f32 %v2051_v50, %v3062_v4 }
 0x341   : > { %v1981_v53 = vpack.c.bf16 %v1628_v51, %v1625_v55  ;;  %v2052_v56 = vpop.f32.mrb[56].mxu1 }
 0x342   : > { %v2053_v9 = vpop.f32.mrb[57].mxu1 }
 0x343   : > { %1997 = vst [vmem:[%s3070_s9 + $0x28] sm:$0xff] %v1981_v53   ;;  %v2054_v57 = vadd.f32 %v2053_v9, %v2052_v56  ;;  %v2055_v7 = vpop.f32.mrb[58].mxu1 }
 0x344   : > { %v2056_v12 = vpop.f32.mrb[59].mxu1 }
 0x345   : > { %v2057_v58 = vadd.f32 %v2056_v12, %v2055_v7  ;;  %v1633_v59 = vadd.f32 %v2054_v57, %v3062_v4 }
 0x347   : > { %v1636_v60 = vadd.f32 %v2057_v58, %v3062_v4 }
 0x349   : > { %v1986_v62 = vpack.c.bf16 %v1636_v60, %v1633_v59  ;;  %v2058_v0 = vpop.f32.mrb[60].mxu1 }
 0x34a   : > { %v2059_v1 = vpop.f32.mrb[61].mxu1 }
 0x34b   : > { %1998 = vst [vmem:[%s3070_s9 + $0x30] sm:$0xff] %v1986_v62   ;;  %v2060_v2 = vadd.f32 %v2059_v1, %v2058_v0  ;;  %v2061_v3 = vpop.f32.mrb[62].mxu1 }
 0x34c   : > { %v2062_v5 = vpop.f32.mrb[63].mxu1 }
 0x34d   : > { %v2063_v18 = vadd.f32 %v2062_v5, %v2061_v3  ;;  %v1641_v10 = vadd.f32 %v2060_v2, %v3062_v4 }
 0x34f   : > { %v1644_v47 = vadd.f32 %v2063_v18, %v3062_v4 }
 0x351   : > { %v1991_v16 = vpack.c.bf16 %v1644_v47, %v1641_v10 }
 0x353   : > { %1999 = vst [vmem:[%s3070_s9 + $0x38] sm:$0xff] %v1991_v16  }
 0x354 PF: > { %s18_s27 = sadd.s32 1, %s2302_s27  }
 0x355   : > { %p15_p4 = scmp.ge.s32.totalorder %s18_s27, 4  }
 0x357   :  { %17 = sbr.rel (!%p15_p4) target bundleno = 1 (0x1), region = 85 }

</bundles_post_ra>
